<compile_context>
chip_gen: v6e
topology: v6e:2x2x1
jax: 0.10.0
libtpu: 0.0.40
codegen_flags: <defaults>
</compile_context>

<pallas_src>
import functools
import math

import jax
import jax.numpy as jnp
import numpy as np
from jax import lax
from jax.experimental import pallas as pl
from jax.experimental.pallas import tpu as pltpu


# --------------------------------------------------------------------------- helpers

def _physical_vmem_bytes():
    """Per-core VMEM capacity; conservative fallback if the query is unavailable."""
    try:
        info = pltpu.get_tpu_info()
        v = getattr(info, "vmem_capacity_bytes", None)
        if v:
            return int(v)
    except Exception:
        pass
    return 64 << 20  # v7x has the smallest VMEM (64 MiB); safe lower bound.


def _valid_head_groups(n_heads, attn_ch):
    """Head-group sizes whose input/output lane widths satisfy the (8,128) rule."""
    out = []
    for g in range(n_heads, 0, -1):
        if n_heads % g:
            continue
        if g == n_heads or (g * attn_ch) % 128 == 0:
            out.append(g)
    return out  # descending, never empty (g == n_heads always valid)


def _store_chunk(attn_ch, g):
    """Heads per output store so every store is a multiple of 128 lanes (unmasked vst)."""
    if attn_ch % 128 == 0:
        return 1
    if 128 % attn_ch == 0 and g % (128 // attn_ch) == 0:
        return 128 // attn_ch
    return 1  # unusual attn_ch: fall back to masked stores


def _pick_tile(n, target):
    """Largest divisor of n that is <= target and a multiple of 8 (or n itself)."""
    if n <= target:
        return n
    for d in range(target, 7, -1):
        if n % d == 0 and d % 8 == 0:
            return d
    # TODO(synk): pad/mask ragged context lengths instead of one oversized tile.
    return n


def _recip(x, approx):
    return pl.reciprocal(x, approx=True) if approx else 1.0 / x


def _cost_estimate(bs, n_ctx, n_heads, attn_ch, itemsize):
    return pl.CostEstimate(
        flops=4 * bs * n_heads * n_ctx * n_ctx * attn_ch,
        transcendentals=bs * n_heads * n_ctx * n_ctx,
        bytes_accessed=(bs * n_ctx * 3 * n_heads * attn_ch
                        + bs * n_ctx * n_heads * attn_ch) * itemsize,
    )


# --------------------------------------------------------------------------- kernels

def _dense_kernel(qkv_ref, out_ref, p_ref, *, attn_ch, g, store_chunk, mxu_dtype, approx):
    """One (batch, head-group) grid step; whole n_ctx resident.

    qkv_ref: (1, n_ctx, g*3*attn_ch)   lanes are [h0: q|k|v][h1: q|k|v]...
    out_ref: (1, n_ctx, g*attn_ch)
    p_ref:   (n_ctx, n_ctx) f32 scratch shared by all heads (serializes them).
    """
    c = attn_ch
    s4 = float(c) ** -0.25          # reference scales both q and k by attn_ch**-0.25
    outs = []
    for h in range(g):
        base = 3 * c * h
        # Ref slices (strided vld) — no full-block value materialization.
        q = (qkv_ref[0, :, base:base + c] * s4).astype(mxu_dtype)
        k = (qkv_ref[0, :, base + c:base + 2 * c] * s4).astype(mxu_dtype)
        v = qkv_ref[0, :, base + 2 * c:base + 3 * c].astype(mxu_dtype)

        s = lax.dot_general(q, k, (((1,), (1,)), ((), ())),
                            preferred_element_type=jnp.float32)       # (n_ctx, n_ctx)
        m = jnp.max(s, axis=-1, keepdims=True)
        p_ref[...] = jnp.exp(s - m)                                   # shared f32 scratch
        p = p_ref[...]
        l = jnp.sum(p, axis=-1, keepdims=True)
        o = jnp.dot(p.astype(mxu_dtype), v, preferred_element_type=jnp.float32)
        o = o * _recip(l, approx)                                     # softmax normalization
        outs.append(o.astype(out_ref.dtype))

        if len(outs) == store_chunk:                                  # lane-dense store
            blk = outs[0] if store_chunk == 1 else jnp.concatenate(outs, axis=-1)
            out_ref[0, :, (h - store_chunk + 1) * c:(h + 1) * c] = blk
            outs = []


def _flash_kernel(q_ref, kv_ref, out_ref, m_ref, l_ref, acc_ref, *,
                  attn_ch, g, store_chunk, mxu_dtype, approx):
    """KV-tiled online softmax.  Grid: (bs, head_groups, q_tiles, kv_tiles)."""
    c = attn_ch
    s4 = float(c) ** -0.25
    ki = pl.program_id(3)

    @pl.when(ki == 0)
    def _init():
        m_ref[...] = jnp.full(m_ref.shape, -jnp.inf, jnp.float32)
        l_ref[...] = jnp.zeros(l_ref.shape, jnp.float32)
        acc_ref[...] = jnp.zeros(acc_ref.shape, jnp.float32)

    for h in range(g):
        base = 3 * c * h
        q = (q_ref[0, :, base:base + c] * s4).astype(mxu_dtype)
        k = (kv_ref[0, :, base + c:base + 2 * c] * s4).astype(mxu_dtype)
        v = kv_ref[0, :, base + 2 * c:base + 3 * c].astype(mxu_dtype)

        s = lax.dot_general(q, k, (((1,), (1,)), ((), ())),
                            preferred_element_type=jnp.float32)       # (tq, tk)
        m_prev = m_ref[h]
        m_new = jnp.maximum(m_prev, jnp.max(s, axis=-1, keepdims=True))
        alpha = jnp.exp(m_prev - m_new)
        p = jnp.exp(s - m_new)
        l_ref[h] = alpha * l_ref[h] + jnp.sum(p, axis=-1, keepdims=True)
        acc_ref[h] = alpha * acc_ref[h] + jnp.dot(
            p.astype(mxu_dtype), v, preferred_element_type=jnp.float32)
        m_ref[h] = m_new

    @pl.when(ki == pl.num_programs(3) - 1)
    def _finalize():
        for h0 in range(0, g, store_chunk):
            outs = [(acc_ref[h] * _recip(l_ref[h], approx)).astype(out_ref.dtype)
                    for h in range(h0, h0 + store_chunk)]
            blk = outs[0] if store_chunk == 1 else jnp.concatenate(outs, axis=-1)
            out_ref[0, :, h0 * c:(h0 + store_chunk) * c] = blk


# --------------------------------------------------------------------------- wrapper

def qkv_multihead_attention(qkv, n_heads, *, head_group=None, q_tile=None, kv_tile=None,
                            mxu_dtype=None, approx_recip=False, force_flash=False,
                            vmem_limit_bytes=None):
    """Pallas equivalent of QKVMultiheadAttention.forward.

    qkv: (bs, n_ctx, width) with width = 3 * n_heads * attn_ch.
    Returns (bs, n_ctx, n_heads * attn_ch), same dtype as qkv.
    """
    bs, n_ctx, width = qkv.shape
    assert width % (3 * n_heads) == 0, "width must equal 3 * n_heads * attn_ch"
    attn_ch = width // (3 * n_heads)
    itemsize = qkv.dtype.itemsize
    mxu_dtype = qkv.dtype if mxu_dtype is None else mxu_dtype

    phys = _physical_vmem_bytes()
    budget = int(0.60 * phys)                                   # blocks + scratch target
    if vmem_limit_bytes is None:
        vmem_limit_bytes = min(int(0.70 * phys), 100 << 20)

    groups = _valid_head_groups(n_heads, attn_ch)

    def dense_fits(g):
        io = 2 * (n_ctx * g * 3 * attn_ch + n_ctx * g * attn_ch) * itemsize  # dbl-buffered
        scores = 3 * n_ctx * n_ctx * 4      # s value + p value + shared scratch (serialized)
        return io + scores <= budget

    g_dense = head_group
    if g_dense is None and not force_flash:
        fitting = [g for g in groups if dense_fits(g)]
        # Prefer >= 2 grid steps so both v7x TensorCores get work (no-op on v5e/v6e).
        # TODO(synk): add a parallel q-tile axis to the dense path for bs=1, n_heads=1.
        pref = [g for g in fitting if bs * (n_heads // g) >= 2]
        if fitting:
            g_dense = (pref or fitting)[0]
    if force_flash:
        g_dense = None

    ce = _cost_estimate(bs, n_ctx, n_heads, attn_ch, itemsize)
    out_shape = jax.ShapeDtypeStruct((bs, n_ctx, n_heads * attn_ch), qkv.dtype)

    if g_dense is not None:
        g = g_dense
        assert n_heads % g == 0
        kern = functools.partial(_dense_kernel, attn_ch=attn_ch, g=g,
                                 store_chunk=_store_chunk(attn_ch, g),
                                 mxu_dtype=mxu_dtype, approx=approx_recip)
        return pl.pallas_call(
            kern, out_shape=out_shape, cost_estimate=ce,
            grid_spec=pltpu.PrefetchScalarGridSpec(
                num_scalar_prefetch=0,
                grid=(bs, n_heads // g),
                in_specs=[pl.BlockSpec((1, n_ctx, g * 3 * attn_ch),
                                       lambda b, hg: (b, 0, hg))],
                out_specs=pl.BlockSpec((1, n_ctx, g * attn_ch),
                                       lambda b, hg: (b, 0, hg)),
                scratch_shapes=[pltpu.VMEM((n_ctx, n_ctx), jnp.float32)]),
            compiler_params=pltpu.CompilerParams(
                dimension_semantics=("parallel", "parallel"),
                vmem_limit_bytes=vmem_limit_bytes),
        )(qkv)

    # ---- KV-tiled online-softmax (flash) path: whole-context scores don't fit VMEM.
    g = min(groups)                         # smallest layout-valid head group per step
    tq = q_tile or _pick_tile(n_ctx, 256)
    tk = kv_tile or _pick_tile(n_ctx, 256)
    assert n_ctx % tq == 0 and n_ctx % tk == 0
    kern = functools.partial(_flash_kernel, attn_ch=attn_ch, g=g,
                             store_chunk=_store_chunk(attn_ch, g),
                             mxu_dtype=mxu_dtype, approx=approx_recip)
    return pl.pallas_call(
        kern, out_shape=out_shape, cost_estimate=ce,
        grid_spec=pltpu.PrefetchScalarGridSpec(
            num_scalar_prefetch=0,
            grid=(bs, n_heads // g, n_ctx // tq, n_ctx // tk),
            in_specs=[
                pl.BlockSpec((1, tq, g * 3 * attn_ch), lambda b, hg, qi, ki: (b, qi, hg)),
                pl.BlockSpec((1, tk, g * 3 * attn_ch), lambda b, hg, qi, ki: (b, ki, hg)),
            ],
            out_specs=pl.BlockSpec((1, tq, g * attn_ch), lambda b, hg, qi, ki: (b, qi, hg)),
            scratch_shapes=[pltpu.VMEM((g, tq, 1), jnp.float32),        # running max
                            pltpu.VMEM((g, tq, 1), jnp.float32),        # running sum
                            pltpu.VMEM((g, tq, attn_ch), jnp.float32)]),  # accumulator
        compiler_params=pltpu.CompilerParams(
            dimension_semantics=("parallel", "parallel", "parallel", "arbitrary"),
            vmem_limit_bytes=vmem_limit_bytes),
    )(qkv, qkv)


# --------------------------------------------------------------------------- reference

def _reference(qkv, n_heads):
    """Pure-JAX transcription of the PyTorch forward for validation."""
    bs, n_ctx, width = qkv.shape
    attn_ch = width // n_heads // 3
    scale = 1.0 / math.sqrt(math.sqrt(attn_ch))
    qkv_r = qkv.reshape(bs, n_ctx, n_heads, -1)
    q = qkv_r[..., :attn_ch]
    k = qkv_r[..., attn_ch:2 * attn_ch]
    v = qkv_r[..., 2 * attn_ch:]
    w = jnp.einsum('bthc,bshc->bhts', q * scale, k * scale)
    w = jax.nn.softmax(w.astype(jnp.float32), axis=-1).astype(w.dtype)
    return jnp.einsum('bhts,bshc->bthc', w, v).reshape(bs, n_ctx, -1)


if __name__ == "__main__":
    # Small shapes consistent with the module: bs=2, n_ctx=16, n_heads=2, attn_ch=64.
    bs, n_ctx, n_heads, attn_ch = 2, 16, 2, 64
    width = 3 * n_heads * attn_ch

    qkv = jax.random.normal(jax.random.PRNGKey(0), (bs, n_ctx, width), dtype=jnp.float32)
    ref = jax.block_until_ready(_reference(qkv, n_heads))

    # Dense (whole-context) path, exact numerics.
    out = jax.block_until_ready(qkv_multihead_attention(qkv, n_heads))
    assert out.shape == (bs, n_ctx, n_heads * attn_ch)
    np.testing.assert_allclose(np.asarray(out), np.asarray(ref), rtol=1e-5, atol=1e-5)

    # KV-tiled online-softmax (flash) path, forced with small tiles to exercise it.
    out_f = jax.block_until_ready(
        qkv_multihead_attention(qkv, n_heads, force_flash=True, q_tile=8, kv_tile=8))
    np.testing.assert_allclose(np.asarray(out_f), np.asarray(ref), rtol=1e-5, atol=1e-5)

    # bf16 MXU operands + EUP approx reciprocal (fast path on v6e/v7x), loose tolerance.
    out_b = jax.block_until_ready(
        qkv_multihead_attention(qkv, n_heads, mxu_dtype=jnp.bfloat16, approx_recip=True))
    np.testing.assert_allclose(np.asarray(out_b), np.asarray(ref), rtol=5e-2, atol=5e-2)

    print("KERNEL_OK")
</pallas_src>

<mosaic_0001>
module attributes {stable_mosaic.version = 11 : i64} {
  func.func @_dense_kernel(%arg0: i32, %arg1: i32, %arg2: memref<1x16x384xf32, #tpu.memory_space<vmem>>, %arg3: memref<1x16x128xf32, #tpu.memory_space<vmem>>, %arg4: memref<16x16xf32, #tpu.memory_space<vmem>>) attributes {dimension_semantics = [#tpu.dimension_semantics<parallel>, #tpu.dimension_semantics<parallel>], iteration_bounds = array<i64: 2, 1>, scalar_prefetch = 0 : i64, scratch_operands = 1 : i64, tpu.core_type = #tpu.core_type<tc>, window_params = [{transform_indices = @transform_0, window_bounds = array<i64: 1, 16, 384>}, {transform_indices = @transform_1, window_bounds = array<i64: 1, 16, 128>}]} {
    %c0 = arith.constant 0 : index
    %c0_0 = arith.constant 0 : index
    %c0_1 = arith.constant 0 : index
    %0 = vector.load %arg2[%c0, %c0_0, %c0_1] : memref<1x16x384xf32, #tpu.memory_space<vmem>>, vector<1x16x64xf32>
    %1 = vector.shape_cast %0 : vector<1x16x64xf32> to vector<16x64xf32>
    %cst = arith.constant 0.353553385 : f32
    %2 = vector.broadcast %cst : f32 to vector<16x64xf32>
    %3 = arith.mulf %1, %2 : vector<16x64xf32>
    %c0_2 = arith.constant 0 : index
    %c0_3 = arith.constant 0 : index
    %c64 = arith.constant 64 : index
    %4 = vector.load %arg2[%c0_2, %c0_3, %c64] : memref<1x16x384xf32, #tpu.memory_space<vmem>>, vector<1x16x64xf32>
    %5 = vector.shape_cast %4 : vector<1x16x64xf32> to vector<16x64xf32>
    %cst_4 = arith.constant 0.353553385 : f32
    %6 = vector.broadcast %cst_4 : f32 to vector<16x64xf32>
    %7 = arith.mulf %5, %6 : vector<16x64xf32>
    %c0_5 = arith.constant 0 : index
    %c0_6 = arith.constant 0 : index
    %c128 = arith.constant 128 : index
    %8 = vector.load %arg2[%c0_5, %c0_6, %c128] : memref<1x16x384xf32, #tpu.memory_space<vmem>>, vector<1x16x64xf32>
    %9 = vector.shape_cast %8 : vector<1x16x64xf32> to vector<16x64xf32>
    %cst_7 = arith.constant dense<0.000000e+00> : vector<16x16xf32>
    %10 = tpu.matmul %3, %7, %cst_7 {dimension_numbers = #tpu.dot_dimension_numbers<[1], [1], [0], [0], [0, 0, 1, 0], [], []>} : vector<16x64xf32>, vector<16x64xf32>, vector<16x16xf32> -> vector<16x16xf32>
    %cst_8 = arith.constant dense<0xFF800000> : vector<16xf32>
    %11 = vector.multi_reduction <maximumf>, %10, %cst_8 [1] : vector<16x16xf32> to vector<16xf32>
    %12 = vector.shape_cast %11 : vector<16xf32> to vector<16x1xf32>
    %13 = vector.broadcast %12 : vector<16x1xf32> to vector<16x16xf32>
    %14 = arith.subf %10, %13 : vector<16x16xf32>
    %15 = math.exp %14 : vector<16x16xf32>
    %c0_9 = arith.constant 0 : index
    %c0_10 = arith.constant 0 : index
    %16 = vector.load %arg4[%c0_9, %c0_10] : memref<16x16xf32, #tpu.memory_space<vmem>>, vector<16x16xf32>
    tpu.vector_store %arg4[%c0_9, %c0_10], %15 {strides = array<i32>} : memref<16x16xf32, #tpu.memory_space<vmem>>, vector<16x16xf32>,
    %c0_11 = arith.constant 0 : index
    %c0_12 = arith.constant 0 : index
    %17 = vector.load %arg4[%c0_11, %c0_12] : memref<16x16xf32, #tpu.memory_space<vmem>>, vector<16x16xf32>
    %cst_13 = arith.constant dense<0.000000e+00> : vector<16xf32>
    %18 = vector.multi_reduction <add>, %17, %cst_13 [1] : vector<16x16xf32> to vector<16xf32>
    %19 = vector.shape_cast %18 : vector<16xf32> to vector<16x1xf32>
    %cst_14 = arith.constant dense<0.000000e+00> : vector<16x64xf32>
    %20 = tpu.matmul %17, %9, %cst_14 {dimension_numbers = #tpu.dot_dimension_numbers<[1], [0], [0], [1], [0, 0, 1, 1], [], []>} : vector<16x16xf32>, vector<16x64xf32>, vector<16x64xf32> -> vector<16x64xf32>
    %cst_15 = arith.constant 1.000000e+00 : f32
    %21 = vector.broadcast %cst_15 : f32 to vector<16x1xf32>
    %22 = arith.divf %21, %19 : vector<16x1xf32>
    %23 = vector.broadcast %22 : vector<16x1xf32> to vector<16x64xf32>
    %24 = arith.mulf %20, %23 : vector<16x64xf32>
    %c0_16 = arith.constant 0 : index
    %c0_17 = arith.constant 0 : index
    %c192 = arith.constant 192 : index
    %25 = vector.load %arg2[%c0_16, %c0_17, %c192] : memref<1x16x384xf32, #tpu.memory_space<vmem>>, vector<1x16x64xf32>
    %26 = vector.shape_cast %25 : vector<1x16x64xf32> to vector<16x64xf32>
    %cst_18 = arith.constant 0.353553385 : f32
    %27 = vector.broadcast %cst_18 : f32 to vector<16x64xf32>
    %28 = arith.mulf %26, %27 : vector<16x64xf32>
    %c0_19 = arith.constant 0 : index
    %c0_20 = arith.constant 0 : index
    %c256 = arith.constant 256 : index
    %29 = vector.load %arg2[%c0_19, %c0_20, %c256] : memref<1x16x384xf32, #tpu.memory_space<vmem>>, vector<1x16x64xf32>
    %30 = vector.shape_cast %29 : vector<1x16x64xf32> to vector<16x64xf32>
    %cst_21 = arith.constant 0.353553385 : f32
    %31 = vector.broadcast %cst_21 : f32 to vector<16x64xf32>
    %32 = arith.mulf %30, %31 : vector<16x64xf32>
    %c0_22 = arith.constant 0 : index
    %c0_23 = arith.constant 0 : index
    %c320 = arith.constant 320 : index
    %33 = vector.load %arg2[%c0_22, %c0_23, %c320] : memref<1x16x384xf32, #tpu.memory_space<vmem>>, vector<1x16x64xf32>
    %34 = vector.shape_cast %33 : vector<1x16x64xf32> to vector<16x64xf32>
    %cst_24 = arith.constant dense<0.000000e+00> : vector<16x16xf32>
    %35 = tpu.matmul %28, %32, %cst_24 {dimension_numbers = #tpu.dot_dimension_numbers<[1], [1], [0], [0], [0, 0, 1, 0], [], []>} : vector<16x64xf32>, vector<16x64xf32>, vector<16x16xf32> -> vector<16x16xf32>
    %cst_25 = arith.constant dense<0xFF800000> : vector<16xf32>
    %36 = vector.multi_reduction <maximumf>, %35, %cst_25 [1] : vector<16x16xf32> to vector<16xf32>
    %37 = vector.shape_cast %36 : vector<16xf32> to vector<16x1xf32>
    %38 = vector.broadcast %37 : vector<16x1xf32> to vector<16x16xf32>
    %39 = arith.subf %35, %38 : vector<16x16xf32>
    %40 = math.exp %39 : vector<16x16xf32>
    %c0_26 = arith.constant 0 : index
    %c0_27 = arith.constant 0 : index
    %41 = vector.load %arg4[%c0_26, %c0_27] : memref<16x16xf32, #tpu.memory_space<vmem>>, vector<16x16xf32>
    tpu.vector_store %arg4[%c0_26, %c0_27], %40 {strides = array<i32>} : memref<16x16xf32, #tpu.memory_space<vmem>>, vector<16x16xf32>,
    %c0_28 = arith.constant 0 : index
    %c0_29 = arith.constant 0 : index
    %42 = vector.load %arg4[%c0_28, %c0_29] : memref<16x16xf32, #tpu.memory_space<vmem>>, vector<16x16xf32>
    %cst_30 = arith.constant dense<0.000000e+00> : vector<16xf32>
    %43 = vector.multi_reduction <add>, %42, %cst_30 [1] : vector<16x16xf32> to vector<16xf32>
    %44 = vector.shape_cast %43 : vector<16xf32> to vector<16x1xf32>
    %cst_31 = arith.constant dense<0.000000e+00> : vector<16x64xf32>
    %45 = tpu.matmul %42, %34, %cst_31 {dimension_numbers = #tpu.dot_dimension_numbers<[1], [0], [0], [1], [0, 0, 1, 1], [], []>} : vector<16x16xf32>, vector<16x64xf32>, vector<16x64xf32> -> vector<16x64xf32>
    %cst_32 = arith.constant 1.000000e+00 : f32
    %46 = vector.broadcast %cst_32 : f32 to vector<16x1xf32>
    %47 = arith.divf %46, %44 : vector<16x1xf32>
    %48 = vector.broadcast %47 : vector<16x1xf32> to vector<16x64xf32>
    %49 = arith.mulf %45, %48 : vector<16x64xf32>
    %50 = tpu.concatenate %24, %49 in 1 : vector<16x64xf32>, vector<16x64xf32> -> vector<16x128xf32>
    %c0_33 = arith.constant 0 : index
    %c0_34 = arith.constant 0 : index
    %c0_35 = arith.constant 0 : index
    %51 = vector.load %arg3[%c0_33, %c0_34, %c0_35] : memref<1x16x128xf32, #tpu.memory_space<vmem>>, vector<1x16x128xf32>
    %52 = vector.shape_cast %51 : vector<1x16x128xf32> to vector<16x128xf32>
    %53 = vector.shape_cast %50 : vector<16x128xf32> to vector<1x16x128xf32>
    tpu.vector_store %arg3[%c0_33, %c0_34, %c0_35], %53 {strides = array<i32>} : memref<1x16x128xf32, #tpu.memory_space<vmem>>, vector<1x16x128xf32>,
    return
  }
  func.func @transform_0(%arg0: i32, %arg1: i32) -> (i32, i32, i32) {
    %c0_i32 = arith.constant 0 : i32
    %c0_i32_0 = arith.constant 0 : i32
    return %arg0, %c0_i32, %arg1 : i32, i32, i32
  }
  func.func @transform_1(%arg0: i32, %arg1: i32) -> (i32, i32, i32) {
    %c0_i32 = arith.constant 0 : i32
    %c0_i32_0 = arith.constant 0 : i32
    return %arg0, %c0_i32, %arg1 : i32, i32, i32
  }
}

</mosaic_0001>

<bundles_post_ra>
// kernel: tpu_custom_call.1
= control target key start
LH: loop header
LB: loop body
LE: loop exit
PB: predicated region body
PF: predicated region fallthrough
CT: control target
= control target key end

     0   :  { %6 = vsyncpa [#allocation4], 0  ;;  %s1167_s0 = inlined_call_operand.hbm [shape: f32[2,16,384], index: 0, kind: input, shape index: {}]   ;;  %s1168_s1 = inlined_call_operand.hbm [shape: f32[2,16,128], index: 1, kind: output, shape index: {}]  }
   0x1   :  { %8 = vsyncpa [#allocation4 + $0x1], 0 }
   0x2   :  { %9 = vsyncpa [#allocation5], 0 }
   0x3   :  { %11 = vsyncpa [#allocation5 + $0x1], 0  ;;  %s971_s6 = smov 0   ;;  %s973_s7 = smov 0  }
   0x4   :  { %s975_s8 = smov 0   ;;  %s977_s9 = smov 0  }
   0x5   :  { %s979_s10 = smov 0   ;;  %s981_s11 = smov 0  }
   0x6 LB: > { %s689_s12 = sadd.s32 4294967295, %s952_s11   ;;  %s690_s13 = sadd.s32 4294967294, %s952_s11   ;;  %s952_s11 = sphi %s981_s11, %s17_s11   ;;  %s948_s10 = sphi %s979_s10, %s1179_s10   ;;  %s944_s9 = sphi %s977_s9, %s1178_s9   ;;  %s940_s8 = sphi %s975_s8, %s1177_s8   ;;  %s936_s7 = sphi %s973_s7, %s1176_s7   ;;  %s932_s6 = sphi %s971_s6, %s1175_s6  }
   0x7   : > { %s29_s14 = sadd.s32 1, %s948_s10  ;;  %s38_s15 = sadd.s32 1, %s940_s8 }
   0x8   : > { %p31_p0 = scmp.ge.s32.totalorder %s29_s14, 2  ;;  %p45_p1 = scmp.ne.s32.totalorder %s940_s8, %s936_s7 }
   0x9   : > { %p46_p2 = scmp.eq.s32.totalorder %s952_s11, 0  ;;  %p51_p3 = scmp.ne.s32.totalorder %s936_s7, %s932_s6 }
   0xa   : > { %s1181_s14 = smov (%p31_p0, %s29_s14), 0  ;;  %p52_p5 = scmp.eq.s32.totalorder %s689_s12, 0 }
   0xb   : > { %p1012_p4 = por %p46_p2, %p45_p1  ;;  %s33_s17 = ssub.s32 %s948_s10, %s1181_s14 }
   0xc   : > { %p77_p6 = scmp.eq.s32.totalorder %s689_s12, 1  ;;  %p36_p7 = scmp.eq.s32.totalorder %s33_s17, 0 }
   0xd   : > { %p1018_p8 = por %p52_p5, %p51_p3  ;;  %p83_p10 = scmp.eq.s32.totalorder %s690_s13, 1 }
   0xe   : > { %p1022_p9 = por %p77_p6, %p45_p1  ;;  %p773_p13 = scmp.lt.s32.totalorder %s952_s11, 2 }
   0xf   : > { %s1027_s20 = scalar_select %p36_p7, %s940_s8, %s38_s15  }
  0x10   : > { %p1029_p11 = por %p83_p10, %p51_p3  ;;  %s103_s22 = sand.u32 1, %s940_s8  }
  0x11   : > { %s758_s23 = smul.u32 48, %s103_s22  ;;  %p1039_p0 = pnand %p773_p13, %p1012_p4 }
  0x12   : > { %s759_s24 = smul.u32 768, %s948_s10  ;;  %p694_p1 = scmp.ge.s32.totalorder %s952_s11, 1 }
  0x13   : > { %s107_s29 = scalar_lea.vmem [#allocation3], %s758_s23  ;;  %s104_s2 = scalar_lea.sflag [#allocation4], %s103_s22 }
  0x14   : > { %s115_s28 = scalar_lea.hbm %s1167_s0, %s759_s24  ;;  %s116_s30 = sshll.u32 %s107_s29, 4  ;;  %s117_s30 = int_to_ptr.vmem [resolvable:$true] %s116_s30 }
  0x15   : > { %p846_p2 = pneg %p1039_p0  ;;  %s857_s3 = scalar_lea.vmem %s117_s30, 768 }
  0x16   : > { %p858_p3 = scmp.ne.s32.totalorder %s117_s30, %s857_s3  ;;  %s954_s4 = smov [#allocation3]  }
  0x17   : > { %s862_s5 = sshll.u32 %s954_s4, 4  ;;  %s863_s5 = int_to_ptr.vmem [resolvable:$false] %s862_s5 }
  0x18   : > { %p860_p5 = pnand %p858_p3, %p846_p2  ;;  %s864_s12 = scalar_lea.vmem %s863_s5, 1536 }
  0x19   : > { %p865_p4 = scmp.lt.s32.totalorder %s117_s30, %s863_s5  ;;  %p866_p7 = scmp.lt.s32.totalorder %s864_s12, %s857_s3 }
  0x1a   : > { %p861_p6 = pneg %p860_p5 }
  0x1b   : > { %p867_p10 = por %p866_p7, %p865_p4 }
  0x1d   : > { %p868_p13 = pnand %p867_p10, %p861_p6 }
  0x1f   : > { %871 = shalt.err (!%p868_p13)
}
  0x20   : > { %s955_s13 = smov 384   ;;  %s956_s15 = smov 24  }
  0x21   : > { %768 = dma.hbm_to_vmem [thread:$0]  (!%p1039_p0), %s115_s28, 768, %s117_s30, %s104_s2, %s955_s13, %s955_s13, %s956_s15  }
  0x22   : > { %p124_p12 = scmp.lt.s32.totalorder %s952_s11, 3 }
  0x24   : > { %p125_p2 = pnand %p694_p1, %p124_p12 }
  0x25   : > { %s1055_s16 = sand.u32 (!%p125_p2), 1, %s936_s7  }
  0x26   : > { %128 = sbr.rel (%p125_p2) target bundleno = 1230 (0x4ce), region = 24  ;;  %s131_s22 = scalar_lea.sflag (!%p125_p2), [#allocation4], %s1055_s16 }
  0x27   : > { %s760_s17 = smul.u32 (!%p125_p2), 48, %s1055_s16 }
  0x29   : > { %s1059_s23 = scalar_lea.vmem (!%p125_p2), [#allocation3], %s760_s17 }
  0x2b   : > { %923 = dma.done.wait (%p1018_p8), %s131_s22, 768  }
  0x2c   : > { %925 = vsyncadd (%p1018_p8), %s131_s22, 4294966528  ;;  %v155_v0 = vld [vmem:[%s1059_s23 + $0x18] sm:$0xff]  ;;  %v154_v1 = vld [vmem:[%s1059_s23] sm:$0xff]  ;;  %vm166_vm0 = vcmask 523264   ;;  %s957_s24 = smov 64   ;;  %vm250_vm1 = vcmask 130048  }
  0x2d   : > { %v157_v2 = vmul.f32 0.35355338, %v155_v0  ;;  %v156_v3 = vmul.f32 0.35355338, %v154_v1  ;;  %v360_v6 = vld [vmem:[%s1059_s23 + $0x8] sm:$0xff]  ;;  %v361_v7 = vld [vmem:[%s1059_s23 + $0x20] sm:$0xff] }
  0x2e   : > { %v362_v8 = vmul.f32 0.35355338, %v360_v6  ;;  %737 = vmatprep.subr.mxu1 %v361_v7  ;;  %v363_v13 = vmul.f32 0.35355338, %v361_v7  ;;  %v365_v14 = vld [vmem:[%s1059_s23 + $0x28] sm:$0xff]  ;;  %v364_v25 = vld [vmem:[%s1059_s23 + $0x10] sm:$0xff] }
  0x2f   : > { %164 = vrot.lane.b32.xlu0 %v157_v2, %s957_s24  ;;  %734 = vmatprep.mubr.msk.f32.mxu0 %vm166_vm0, %v156_v3  ;;  %v367_v15 = vmul.f32 0.35355338, %v365_v14  ;;  %v366_v26 = vmul.f32 0.35355338, %v364_v25  ;;  %s695_s18 = sshll.u32 %s1055_s16, 4  ;;  %s713_s27 = sshll.u32 %s944_s9, 8 }
  0x30   : > { %738 = vmatpush3.msra.mxu1 %v361_v7  ;;  %s152_s25 = scalar_lea.vmem [#allocation6], %s695_s18  ;;  %s1118_s30 = scalar_lea.hbm %s1168_s1, %s713_s27 }
  0x31   : > { %739 = vmatprep.subr.mxu1 %v360_v6  ;;  %s603_s26 = sshll.u32 %s152_s25, 4  ;;  %s589_s9 = scalar_lea.sflag [#allocation5], %s1055_s16  ;;  %s1111_s26 = int_to_ptr.vmem [resolvable:$true] %s603_s26 }
  0x32   : > { %740 = vmatpush3.msra.mxu1 %v360_v6  ;;  %s872_s2 = scalar_lea.vmem %s1111_s26, 256  ;;  %s958_s3 = smov [#allocation6]  }
  0x33   : > { %162 = vrot.lane.b32.xlu0 %v156_v3, %s957_s24  ;;  %744 = vmatprep.subr.msk.mxu1 %vm166_vm0, %v367_v15  ;;  %p873_p8 = scmp.ne.s32.totalorder %s1111_s26, %s872_s2  ;;  %s876_s4 = sshll.u32 %s958_s3, 4  ;;  %s877_s4 = int_to_ptr.vmem [resolvable:$false] %s876_s4 }
  0x34   : > { %s878_s5 = scalar_lea.vmem %s877_s4, 512  ;;  %p879_p1 = scmp.lt.s32.totalorder %s1111_s26, %s877_s4 }
  0x35   : > { %p874_p12 = pnand %p873_p8, %p1022_p9  ;;  %p880_p3 = scmp.lt.s32.totalorder %s878_s5, %s872_s2 }
  0x37   : > { %370 = vrot.lane.b32.xlu0 %v362_v8, %s957_s24  ;;  %p875_p0 = pneg %p874_p12  ;;  %p881_p5 = por %p880_p3, %p879_p1 }
  0x39   : > { %p882_p6 = pnand %p881_p5, %p875_p0 }
  0xa1   : > { %v165_v4 = vpop.permute.xlu0 %164 }
  0xa2   : > { %730 = vmatprep.subr.msk.mxu0 %vm166_vm0, %v165_v4 }
  0xa3   : > { %731 = vmatpush3.xpose.msk.msra.mxu0 %vm166_vm0, %v165_v4 }
  0xa5   : > { %v163_v5 = vpop.permute.xlu0 %162 }
  0xa6   : > { %732 = vmatprep.subr.msk.mxu0 %vm166_vm0, %v163_v5 }
  0xa7   : > { %733 = vmatpush3.xpose.msk.msra.mxu0 %vm166_vm0, %v163_v5 }
  0xa9   : > { %v371_v27 = vpop.permute.xlu0 %370 }
  0xaa   : > { %735 = vmatmul.mubr.msk.f32.vlgmr.msra.gmra.mxu0 %vm166_vm0, %v157_v2 }
 0x16a   : > { %v736_v9 = vpop.f32.mrf.mxu0 }
 0x16b   : > { %v254_v12 = vsel %vm250_vm1, %v736_v9, -inf }
 0x16c   : > { %v241_v10 = vpop.f32.mrf.mxu0 }
 0x16d   : > { %v251_v11 = vsel %vm250_vm1, %v241_v10, -inf }
 0x16e   : > { %252 = vmax.xlane.f32.xlu1 %v251_v11 }
 0x172   : > { %255 = vmax.xlane.f32.xlu1 %v254_v12 }
 0x183   : > { %372 = vrot.lane.b32.xlu1 %v363_v13, %s957_s24 }
 0x1f7   : > { %v253_v16 = vpop.xlane.xlu1 %252 }
 0x1f8   : > { %v257_v17 = vsub.f32 %v241_v10, %v253_v16 }
 0x1fa   : > { %v259_v18 = vmul.f32 1.442695, %v257_v17 }
 0x1fb   : > { %v256_v19 = vpop.xlane.xlu1 %255 }
 0x1fc   : > { %828 = vpow2.f32 %v259_v18  ;;  %v258_v20 = vsub.f32 %v736_v9, %v256_v19 }
 0x1fe   : > { %v261_v21 = vmul.f32 1.442695, %v258_v20 }
 0x1ff   : > { %v373_v29 = vpop.permute.xlu1 %372 }
 0x200   : > { %830 = vpow2.f32 %v261_v21 }
 0x209   : > { %v829_v22 = vpop.eup %828 }
 0x20a   : > { %263 = vst.msk [vmem:[#allocation2] sm:$0xff] %vm250_vm1, %v829_v22 }
 0x20d   : > { %v831_v23 = vpop.eup %830 }
 0x20e   : > { %264 = vst.msk [vmem:[#allocation2 + $0x8] sm:$0xff] %vm250_vm1, %v831_v23 }
 0x211   : > { %v265_v24 = vld [vmem:[#allocation2] sm:$0xff] }
 0x212   : > { %741 = vmatprep.mubr.msk.f32.mxu1 %vm250_vm1, %v265_v24  ;;  %v267_v50 = vsel %vm250_vm1, %v265_v24, 0.0 }
 0x215   : > { %v266_v28 = vld [vmem:[#allocation2 + $0x8] sm:$0xff] }
 0x216   : > { %742 = vmatmul.mubr.msk.f32.vlgmr.msra.gmra.mxu1 %vm250_vm1, %v266_v28  ;;  %v270_v51 = vsel %vm250_vm1, %v266_v28, 0.0 }
 0x217   : > { %745 = vmatpush3.xpose.msk.msra.mxu1 %vm166_vm0, %v367_v15  ;;  %748 = vmatprep.mubr.msk.f32.mxu1 %vm166_vm0, %v371_v27 }
 0x218   : > { %746 = vmatprep.subr.msk.mxu1 %vm166_vm0, %v366_v26 }
 0x21b   : > { %747 = vmatpush3.xpose.msk.msra.mxu1 %vm166_vm0, %v366_v26 }
 0x21e   : > { %749 = vmatmul.mubr.msk.f32.vlgmr.msra.gmra.mxu1 %vm166_vm0, %v373_v29 }
 0x2d6   : > { %v743_v30 = vpop.f32.mrf.mxu1 }
 0x2d8   : > { %v1093_v31 = vpop.f32.mrf.mxu1 }
 0x2de   : > { %v750_v32 = vpop.f32.mrf.mxu1 }
 0x2df   : > { %v462_v33 = vsel %vm250_vm1, %v750_v32, -inf }
 0x2e0   : > { %463 = vmax.xlane.f32.xlu1 %v462_v33  ;;  %v450_v34 = vpop.f32.mrf.mxu1 }
 0x2e1   : > { %v459_v35 = vsel %vm250_vm1, %v450_v34, -inf }
 0x2e2   : > { %460 = vmax.xlane.f32.xlu0 %v459_v35 }
 0x2f1   : > { %483 = vrot.lane.b32.xlu1 %v364_v25, %s957_s24 }
 0x2f8   : > { %485 = vrot.lane.b32.xlu0 %v365_v14, %s957_s24 }
 0x369   : > { %v464_v36 = vpop.xlane.xlu1 %463 }
 0x36a   : > { %v466_v37 = vsub.f32 %v750_v32, %v464_v36 }
 0x36b   : > { %v461_v38 = vpop.xlane.xlu0 %460 }
 0x36c   : > { %v469_v39 = vmul.f32 1.442695, %v466_v37  ;;  %v465_v40 = vsub.f32 %v450_v34, %v461_v38 }
 0x36d   : > { %v484_v43 = vpop.permute.xlu1 %483 }
 0x36e   : > { %832 = vpow2.f32 %v469_v39  ;;  %v467_v41 = vmul.f32 1.442695, %v465_v40 }
 0x36f   : > { %v486_v42 = vpop.permute.xlu0 %485 }
 0x370   : > { %834 = vpow2.f32 %v467_v41  ;;  %751 = vmatprep.subr.mxu0 %v486_v42 }
 0x371   : > { %752 = vmatpush3.msra.mxu0 %v486_v42 }
 0x372   : > { %753 = vmatprep.subr.mxu0 %v484_v43 }
 0x373   : > { %754 = vmatpush3.msra.mxu0 %v484_v43 }
 0x37b   : > { %v833_v44 = vpop.eup %832 }
 0x37c   : > { %472 = vst.msk [vmem:[#allocation2 + $0x8] sm:$0xff] %vm250_vm1, %v833_v44 }
 0x37d   : > { %v835_v45 = vpop.eup %834 }
 0x37e   : > { %471 = vst.msk [vmem:[#allocation2] sm:$0xff] %vm250_vm1, %v835_v45 }
 0x383   : > { %v474_v46 = vld [vmem:[#allocation2 + $0x8] sm:$0xff] }
 0x384   : > { %v478_v47 = vsel %vm250_vm1, %v474_v46, 0.0 }
 0x385   : > { %479 = vadd.xlane.f32.xlu1 %v478_v47  ;;  %v473_v48 = vld [vmem:[#allocation2] sm:$0xff] }
 0x386   : > { %755 = vmatprep.mubr.msk.f32.mxu0 %vm250_vm1, %v473_v48  ;;  %v475_v49 = vsel %vm250_vm1, %v473_v48, 0.0 }
 0x387   : > { %476 = vadd.xlane.f32.xlu0 %v475_v49  ;;  %756 = vmatmul.mubr.msk.f32.vlgmr.msra.gmra.mxu0 %vm250_vm1, %v474_v46 }
 0x38b   : > { %268 = vadd.xlane.f32.xlu0 %v267_v50 }
 0x38f   : > { %271 = vadd.xlane.f32.xlu0 %v270_v51 }
 0x40e   : > { %v480_v52 = vpop.xlane.xlu1 %479 }
 0x40f   : > { %836 = vrcp.f32 %v480_v52 }
 0x410   : > { %v477_v53 = vpop.xlane.xlu0 %476 }
 0x411   : > { %838 = vrcp.f32 %v477_v53 }
 0x414   : > { %v269_v60 = vpop.xlane.xlu0 %268 }
 0x418   : > { %v272_v61 = vpop.xlane.xlu0 %271 }
 0x419   : > { %840 = vrcp.f32 %v272_v61 }
 0x41a   : > { %842 = vrcp.f32 %v269_v60 }
 0x41c   : > { %v837_v54 = vpop.eup %836 }
 0x41e   : > { %v839_v57 = vpop.eup %838 }
 0x426   : > { %v841_v62 = vpop.eup %840 }
 0x427   : > { %v843_v63 = vpop.eup %842  ;;  %v359_v0 = vmul.f32 %v841_v62, %v743_v30 }
 0x428   : > { %v358_v3 = vmul.f32 %v843_v63, %v1093_v31 }
 0x447   : > { %v757_v55 = vpop.f32.mrf.mxu0 }
 0x448   : > { %v575_v56 = vmul.f32 %v837_v54, %v757_v55 }
 0x449   : > { %v561_v58 = vpop.f32.mrf.mxu0 }
 0x44a   : > { %v574_v59 = vmul.f32 %v839_v57, %v561_v58  ;;  %580 = vrot.lane.b32.xlu1 %v575_v56, %s957_s24 }
 0x44c   : > { %578 = vrot.lane.b32.xlu0 %v574_v59, %s957_s24 }
 0x4bc   : > { %v581_v1 = vpop.permute.xlu1 %580 }
 0x4bd   : > { %v585_v2 = vsel %vm166_vm0, %v359_v0, %v581_v1 }
 0x4be   : > { %587 = vst [vmem:[%s152_s25 + $0x8] sm:$0xff] %v585_v2  ;;  %v579_v4 = vpop.permute.xlu0 %578 }
 0x4bf   : > { %v584_v5 = vsel %vm166_vm0, %v358_v3, %v579_v4 }
 0x4c0   : > { %586 = vst [vmem:[%s152_s25] sm:$0xff] %v584_v5 }
 0x4c1   : > { %885 = shalt.err (!%p882_p6)
}
 0x4c2   : > { %s886_s12 = scalar_lea.hbm %s1118_s30, 256  ;;  %s890_s17 = scalar_lea.hbm %s1168_s1, 512 }
 0x4c3   : > { %p887_p4 = scmp.ne.s32.totalorder %s1118_s30, %s886_s12  ;;  %p891_p13 = scmp.lt.s32.totalorder %s1118_s30, %s1168_s1 }
 0x4c4   : > { %p892_p2 = scmp.lt.s32.totalorder %s890_s17, %s886_s12 }
 0x4c5   : > { %p888_p7 = pnand %p887_p4, %p1022_p9 }
 0x4c6   : > { %p893_p8 = por %p892_p2, %p891_p13 }
 0x4c7   : > { %p889_p10 = pneg %p888_p7 }
 0x4c9   : > { %p894_p12 = pnand %p893_p8, %p889_p10 }
 0x4cb   : > { %897 = shalt.err (!%p894_p12)
}
 0x4cc   : > { %s959_s24 = smov 128   ;;  %s960_s18 = smov 8  }
 0x4cd   : > { %763 = dma.vmem_to_hbm [thread:$0]  (%p1022_p9), %s1111_s26, 256, %s1118_s30, %s589_s9, %s959_s24, %s959_s24, %s960_s18  }
 0x4ce PF: > { %s618_s25 = sand.u32 1, %s932_s6   ;;  %p1174_p0 = scmp.ge.s32.totalorder %s952_s11, 2 }
 0x4cf   : > { %s619_s27 = scalar_lea.sflag [#allocation5], %s618_s25 }
 0x4d0   : > { %p770_p1 = pnand %p1174_p0, %p1029_p11 }
 0x4d2   : > { %p771_p3 = pneg %p770_p1 }
 0x4d4   : > { %927 = dma.done.wait (%p771_p3), %s619_s27, 256  }
 0x4d5   : > { %929 = vsyncadd (%p771_p3), %s619_s27, 4294967040  ;;  %s17_s11 = sadd.s32 1, %s952_s11   ;;  %s1175_s6 = smov %s936_s7 }
 0x4d6   : > { %p14_p5 = scmp.ge.s32.totalorder %s17_s11, 4   ;;  %s1176_s7 = smov %s940_s8 }
 0x4d7   : > { %s1177_s8 = smov %s1027_s20  ;;  %s1178_s9 = smov %s948_s10 }
 0x4d8   : > { %s1179_s10 = smov %s1181_s14  ;;  %16 = sbr.rel (!%p14_p5) target bundleno = 6 (0x6), region = 69 }
 0x4dd   :  { %624 = vsyncpa [#allocation4], 1 }
 0x4de   :  { %626 = vsyncpa [#allocation4 + $0x1], 1 }
 0x4df   :  { %627 = vsyncpa [#allocation5], 1 }
 0x4e0   :  { %629 = vsyncpa [#allocation5 + $0x1], 1 }

</bundles_post_ra>
